<compile_context>
chip_gen: v7x
topology: tpu7x:2x2x1
jax: 0.10.0
libtpu: 0.0.40
codegen_flags: <defaults>
</compile_context>

<pallas_src>
import math
import functools

import jax
import jax.numpy as jnp
from jax.experimental import pallas as pl
from jax.experimental.pallas import tpu as pltpu


def _swish(x):
    return x * jax.nn.sigmoid(x)


def attention_kernel(x_ref, wfc_ref, bfc_ref, wo_ref, bo_ref, o_ref, acc_ref,
                     *, L, dims, hd, compute_dtype, approx_recip):
    h = pl.program_id(1)
    n_heads = pl.num_programs(1)

    Bt = x_ref.shape[0]
    Dp = x_ref.shape[2]          # lane-padded feature dim (multiple of 128, or == dims)
    M = Bt * L

    x = x_ref[...].reshape(M, Dp)                    # f32; leading-dim merge (free)

    @pl.when(h == 0)
    def _init():
        # start the output-projection accumulator at the (padded) bias
        acc_ref[...] = jnp.broadcast_to(bo_ref[...], (M, Dp)).astype(jnp.float32)

    # ---- this head's qkv projection + swish (MXU sees M = Bt*L rows) ------------
    qkv = jnp.dot(x.astype(compute_dtype), wfc_ref[0],
                  preferred_element_type=jnp.float32) + bfc_ref[0]
    qkv = _swish(qkv)                                # (M, 3*hd) float32

    q = qkv[:, 0 * hd:1 * hd].reshape(Bt, L, hd)
    k = qkv[:, 1 * hd:2 * hd].reshape(Bt, L, hd)
    v = qkv[:, 2 * hd:3 * hd].reshape(Bt, L, hd)

    # ---- attention: batched over Bt, contraction on last dims (no transpose) ----
    scale = 1.0 / math.sqrt(float(L))                # module scales by 1/sqrt(L)
    s = jnp.einsum('bld,bmd->blm',
                   q.astype(compute_dtype), k.astype(compute_dtype),
                   preferred_element_type=jnp.float32) * scale          # (Bt, L, L)
    m = jnp.max(s, axis=-1, keepdims=True)
    e = jnp.exp(s - m)
    denom = jnp.sum(e, axis=-1, keepdims=True)
    if approx_recip:
        att = e * pl.reciprocal(denom, approx=True)
    else:
        att = e / denom
    ctx = jnp.einsum('blm,bmd->bld',
                     att.astype(compute_dtype), v.astype(compute_dtype),
                     preferred_element_type=jnp.float32)                # (Bt, L, hd)

    # ---- accumulate this head's share of the output projection ------------------
    acc_ref[...] += jnp.dot(ctx.reshape(M, hd).astype(compute_dtype), wo_ref[0],
                            preferred_element_type=jnp.float32)

    # ---- epilogue: swish -> residual -> layer_norm -> store ----------------------
    @pl.when(h == n_heads - 1)
    def _epilogue():
        mproj = _swish(acc_ref[...])                 # (M, Dp); pad lanes remain 0
        y = x + mproj
        inv_d = 1.0 / float(dims)
        mu = jnp.sum(y, axis=-1, keepdims=True) * inv_d   # pad lanes of y are exactly 0
        d = y - mu
        if Dp != dims:
            lane = jax.lax.broadcasted_iota(jnp.int32, (M, Dp), 1)
            d = jnp.where(lane < dims, d, 0.0)
        var = jnp.sum(d * d, axis=-1, keepdims=True) * inv_d
        out = d * jax.lax.rsqrt(var + 1e-5)
        o_ref[...] = out.astype(o_ref.dtype).reshape(Bt, L, Dp)


def _pick_block_b(B):
    """Largest divisor of B that still leaves >= 2 grid steps on the batch axis."""
    if B < 2:
        return 1
    for d in range(B // 2, 0, -1):
        if B % d == 0:
            return d
    return 1


def _estimate_vmem_bytes(block_b, L, Dp, hd, w_itemsize):
    M = block_b * L
    dbl = 2                                          # pipeline double-buffering
    blocks = (2 * M * Dp * 4) * dbl                  # x block + out block (f32)
    weights = (Dp * 3 * hd + hd * Dp) * w_itemsize * dbl
    biases = (3 * hd + Dp) * 4 * dbl
    acc = M * Dp * 4
    live = M * 3 * hd * 4 + 3 * block_b * L * L * 4 + 2 * M * Dp * 4
    return blocks + weights + biases + acc + live


def attention_forward(x, w_fc, b_fc, w_fcfc, b_fcfc, *, heads, hd,
                      block_b=None, fast_math=True):
    """x: [B, L, dims] float32; weights pre-transposed to [in, out] (torch Linear .T)."""
    B, L, dims = x.shape
    n_qkv = heads * 3 * hd
    assert w_fc.shape == (dims, n_qkv) and b_fc.shape == (1, n_qkv)
    assert w_fcfc.shape == (heads * hd, dims) and b_fcfc.shape == (1, dims)

    if block_b is None:
        block_b = _pick_block_b(B)
    assert B % block_b == 0, "block_b must divide the batch size"

    compute_dtype = jnp.bfloat16 if fast_math else jnp.float32

    # lane-dense feature dim (pad to a multiple of 128); pads stay exactly zero.
    Dp = ((dims + 127) // 128) * 128
    pad = Dp - dims

    xp = jnp.pad(x, ((0, 0), (0, 0), (0, pad))) if pad else x

    # Per-head weight slabs: heads become a leading, BlockSpec-indexed axis so the
    # kernel never slices / concatenates narrow head chunks in-register.
    wfc = w_fc.reshape(dims, heads, 3 * hd).transpose(1, 0, 2)    # (heads, dims, 3hd)
    if pad:
        wfc = jnp.pad(wfc, ((0, 0), (0, pad), (0, 0)))
    wfc = wfc.astype(compute_dtype)
    bfc = b_fc.reshape(heads, 1, 3 * hd).astype(jnp.float32)

    wo = w_fcfc.reshape(heads, hd, dims)                          # (heads, hd, dims)
    if pad:
        wo = jnp.pad(wo, ((0, 0), (0, 0), (0, pad)))
    wo = wo.astype(compute_dtype)
    bo = (jnp.pad(b_fcfc, ((0, 0), (0, pad))) if pad else b_fcfc).astype(jnp.float32)

    kernel = functools.partial(attention_kernel, L=L, dims=dims, hd=hd,
                               compute_dtype=compute_dtype, approx_recip=fast_math)

    grid = (B // block_b, heads)
    w_itemsize = jnp.dtype(compute_dtype).itemsize
    vmem_limit = int(min(max(2 * _estimate_vmem_bytes(block_b, L, Dp, hd, w_itemsize),
                             16 * 2**20), 48 * 2**20))

    out = pl.pallas_call(
        kernel,
        out_shape=jax.ShapeDtypeStruct((B, L, Dp), x.dtype),
        grid_spec=pltpu.PrefetchScalarGridSpec(
            num_scalar_prefetch=0,
            grid=grid,
            in_specs=[
                pl.BlockSpec((block_b, L, Dp), lambda b, h: (b, 0, 0)),   # x (resident over h)
                pl.BlockSpec((1, Dp, 3 * hd), lambda b, h: (h, 0, 0)),    # W_fc head slab
                pl.BlockSpec((1, 1, 3 * hd), lambda b, h: (h, 0, 0)),     # b_fc head slab
                pl.BlockSpec((1, hd, Dp), lambda b, h: (h, 0, 0)),        # W_fcfc head slab
                pl.BlockSpec((1, Dp), lambda b, h: (0, 0)),               # b_fcfc
            ],
            out_specs=pl.BlockSpec((block_b, L, Dp), lambda b, h: (b, 0, 0)),
            scratch_shapes=[pltpu.VMEM((block_b * L, Dp), jnp.float32)],
        ),
        compiler_params=pltpu.CompilerParams(
            dimension_semantics=("parallel", "arbitrary"),
            vmem_limit_bytes=vmem_limit,
        ),
    )(xp, wfc, bfc, wo, bo)

    return out[..., :dims] if pad else out


def reference_forward(x, w_fc, b_fc, w_fcfc, b_fcfc, *, heads, hd):
    """Pure-JAX reference mirroring the PyTorch forward (eval mode)."""
    B, L, dims = x.shape
    qkv = _swish(x @ w_fc + b_fc)                            # [B, L, heads*hd*3]
    qkv = qkv.reshape(B, L, heads, hd * 3)
    q, k, v = qkv[..., :hd], qkv[..., hd:2 * hd], qkv[..., 2 * hd:]
    att = jax.nn.softmax(
        jnp.einsum('bwhd,bmhd->bhwm', q, k) / jnp.sqrt(jnp.float32(L)), axis=-1)
    new_v = jnp.einsum('bhwm,bmhd->bwhd', att, v).reshape(B, L, heads * hd)
    m = _swish(new_v @ w_fcfc + b_fcfc)
    y = x + m
    mu = jnp.mean(y, axis=-1, keepdims=True)
    var = jnp.mean((y - mu) ** 2, axis=-1, keepdims=True)
    return (y - mu) / jnp.sqrt(var + 1e-5)


if __name__ == "__main__":
    # Small shapes consistent with the module: batch=2, seq=8, dims=32, heads=2, hd=16
    B, L, dims, heads, hd = 2, 8, 32, 2, 16
    n_qkv = heads * hd * 3

    key = jax.random.PRNGKey(0)
    kx, k1, k2, k3, k4 = jax.random.split(key, 5)

    x = jax.random.normal(kx, (B, L, dims), dtype=jnp.float32)

    # Deterministic parameter init (torch.nn.Linear-like uniform bounds)
    bound_fc = 1.0 / math.sqrt(dims)
    bound_fcfc = 1.0 / math.sqrt(heads * hd)
    w_fc = jax.random.uniform(k1, (dims, n_qkv), jnp.float32, -bound_fc, bound_fc)
    b_fc = jax.random.uniform(k2, (1, n_qkv), jnp.float32, -bound_fc, bound_fc)
    w_fcfc = jax.random.uniform(k3, (heads * hd, dims), jnp.float32, -bound_fcfc, bound_fcfc)
    b_fcfc = jax.random.uniform(k4, (1, dims), jnp.float32, -bound_fcfc, bound_fcfc)

    ref = reference_forward(x, w_fc, b_fc, w_fcfc, b_fcfc, heads=heads, hd=hd)

    # exact (f32) path: tight check against the reference
    out_exact = attention_forward(x, w_fc, b_fc, w_fcfc, b_fcfc,
                                  heads=heads, hd=hd, fast_math=False)
    out_exact = jax.block_until_ready(out_exact)
    assert out_exact.shape == (B, L, dims)
    assert jnp.allclose(out_exact, ref, atol=1e-3, rtol=1e-3), "f32 kernel mismatch vs reference"

    # fast-math (bf16 matmuls + approx reciprocal) path: loose check
    out_fast = attention_forward(x, w_fc, b_fc, w_fcfc, b_fcfc,
                                 heads=heads, hd=hd, fast_math=True)
    out_fast = jax.block_until_ready(out_fast)
    assert out_fast.shape == (B, L, dims)
    assert jnp.allclose(out_fast, ref, atol=5e-2, rtol=5e-2), "bf16 kernel mismatch vs reference"

    print("KERNEL_OK")
</pallas_src>

<mosaic_0001>
module attributes {stable_mosaic.version = 11 : i64} {
  func.func @attention_kernel(%arg0: i32, %arg1: i32, %arg2: memref<1x8x128xf32, #tpu.memory_space<vmem>>, %arg3: memref<1x128x48xf32, #tpu.memory_space<vmem>>, %arg4: memref<1x1x48xf32, #tpu.memory_space<vmem>>, %arg5: memref<1x16x128xf32, #tpu.memory_space<vmem>>, %arg6: memref<1x128xf32, #tpu.memory_space<vmem>>, %arg7: memref<1x8x128xf32, #tpu.memory_space<vmem>>, %arg8: memref<8x128xf32, #tpu.memory_space<vmem>>) attributes {dimension_semantics = [#tpu.dimension_semantics<parallel>, #tpu.dimension_semantics<arbitrary>], iteration_bounds = array<i64: 2, 2>, scalar_prefetch = 0 : i64, scratch_operands = 1 : i64, tpu.core_type = #tpu.core_type<tc>, window_params = [{transform_indices = @transform_0, window_bounds = array<i64: 1, 8, 128>}, {transform_indices = @transform_1, window_bounds = array<i64: 1, 128, 48>}, {transform_indices = @transform_2, window_bounds = array<i64: 1, 1, 48>}, {transform_indices = @transform_3, window_bounds = array<i64: 1, 16, 128>}, {pipeline_mode = #tpu.pipeline_mode<synchronous>, transform_indices = @transform_4, window_bounds = array<i64: 1, 128>}, {transform_indices = @transform_5, window_bounds = array<i64: 1, 8, 128>}]} {
    %c0 = arith.constant 0 : index
    %c0_0 = arith.constant 0 : index
    %c0_1 = arith.constant 0 : index
    %0 = vector.load %arg2[%c0, %c0_0, %c0_1] : memref<1x8x128xf32, #tpu.memory_space<vmem>>, vector<1x8x128xf32>
    %1 = vector.shape_cast %0 : vector<1x8x128xf32> to vector<8x128xf32>
    %c0_i32 = arith.constant 0 : i32
    %2 = arith.cmpi eq, %arg1, %c0_i32 : i32
    %3 = arith.extui %2 : i1 to i32
    %c0_i32_2 = arith.constant 0 : i32
    %4 = arith.cmpi ne, %3, %c0_i32_2 : i32
    scf.if %4 {
      %c0_24 = arith.constant 0 : index
      %c0_25 = arith.constant 0 : index
      %47 = vector.load %arg6[%c0_24, %c0_25] : memref<1x128xf32, #tpu.memory_space<vmem>>, vector<1x128xf32>
      %48 = vector.shape_cast %47 : vector<1x128xf32> to vector<1x128xf32>
      %49 = vector.broadcast %48 : vector<1x128xf32> to vector<8x128xf32>
      %c0_26 = arith.constant 0 : index
      %c0_27 = arith.constant 0 : index
      %50 = vector.load %arg8[%c0_26, %c0_27] : memref<8x128xf32, #tpu.memory_space<vmem>>, vector<8x128xf32>
      tpu.vector_store %arg8[%c0_26, %c0_27], %49 {strides = array<i32>} : memref<8x128xf32, #tpu.memory_space<vmem>>, vector<8x128xf32>,
    } else {
    }
    %c0_3 = arith.constant 0 : index
    %c0_4 = arith.constant 0 : index
    %c0_5 = arith.constant 0 : index
    %5 = vector.load %arg3[%c0_3, %c0_4, %c0_5] : memref<1x128x48xf32, #tpu.memory_space<vmem>>, vector<1x128x48xf32>
    %6 = vector.shape_cast %5 : vector<1x128x48xf32> to vector<128x48xf32>
    %cst = arith.constant dense<0.000000e+00> : vector<8x48xf32>
    %7 = tpu.matmul %1, %6, %cst {dimension_numbers = #tpu.dot_dimension_numbers<[1], [0], [0], [1], [0, 0, 1, 1], [], []>} : vector<8x128xf32>, vector<128x48xf32>, vector<8x48xf32> -> vector<8x48xf32>
    %c0_6 = arith.constant 0 : index
    %c0_7 = arith.constant 0 : index
    %c0_8 = arith.constant 0 : index
    %8 = vector.load %arg4[%c0_6, %c0_7, %c0_8] : memref<1x1x48xf32, #tpu.memory_space<vmem>>, vector<1x1x48xf32>
    %9 = vector.shape_cast %8 : vector<1x1x48xf32> to vector<1x48xf32>
    %10 = vector.broadcast %9 : vector<1x48xf32> to vector<8x48xf32>
    %11 = arith.addf %7, %10 : vector<8x48xf32>
    %12 = arith.negf %11 : vector<8x48xf32>
    %13 = math.exp %12 : vector<8x48xf32>
    %cst_9 = arith.constant 1.000000e+00 : f32
    %14 = vector.broadcast %cst_9 : f32 to vector<8x48xf32>
    %15 = arith.addf %14, %13 : vector<8x48xf32>
    %16 = arith.divf %14, %15 : vector<8x48xf32>
    %17 = arith.mulf %11, %16 : vector<8x48xf32>
    %18 = vector.extract_strided_slice %17 {offsets = [0, 0], sizes = [8, 16], strides = [1, 1]} : vector<8x48xf32> to vector<8x16xf32>
    %19 = vector.shape_cast %18 : vector<8x16xf32> to vector<1x8x16xf32>
    %20 = vector.extract_strided_slice %17 {offsets = [0, 16], sizes = [8, 16], strides = [1, 1]} : vector<8x48xf32> to vector<8x16xf32>
    %21 = vector.shape_cast %20 : vector<8x16xf32> to vector<1x8x16xf32>
    %22 = vector.extract_strided_slice %17 {offsets = [0, 32], sizes = [8, 16], strides = [1, 1]} : vector<8x48xf32> to vector<8x16xf32>
    %23 = vector.shape_cast %22 : vector<8x16xf32> to vector<1x8x16xf32>
    "tpu.trace_start"() <{level = 10 : i32, message = "bld,bmd->blm"}> : () -> ()
    %cst_10 = arith.constant dense<0.000000e+00> : vector<1x8x8xf32>
    %24 = tpu.matmul %19, %21, %cst_10 {dimension_numbers = #tpu.dot_dimension_numbers<[2], [2], [1], [1], [0, 0, 0, 1, 1, 1], [0], [0]>} : vector<1x8x16xf32>, vector<1x8x16xf32>, vector<1x8x8xf32> -> vector<1x8x8xf32>
    "tpu.trace_stop"() : () -> ()
    %cst_11 = arith.constant 0.353553385 : f32
    %25 = vector.broadcast %cst_11 : f32 to vector<1x8x8xf32>
    %26 = arith.mulf %24, %25 : vector<1x8x8xf32>
    %cst_12 = arith.constant dense<0xFF800000> : vector<1x8xf32>
    %27 = vector.multi_reduction <maximumf>, %26, %cst_12 [2] : vector<1x8x8xf32> to vector<1x8xf32>
    %28 = vector.shape_cast %27 : vector<1x8xf32> to vector<1x8x1xf32>
    %29 = vector.broadcast %28 : vector<1x8x1xf32> to vector<1x8x8xf32>
    %30 = arith.subf %26, %29 : vector<1x8x8xf32>
    %31 = math.exp %30 : vector<1x8x8xf32>
    %cst_13 = arith.constant dense<0.000000e+00> : vector<1x8xf32>
    %32 = vector.multi_reduction <add>, %31, %cst_13 [2] : vector<1x8x8xf32> to vector<1x8xf32>
    %33 = vector.shape_cast %32 : vector<1x8xf32> to vector<1x8x1xf32>
    %34 = vector.broadcast %33 : vector<1x8x1xf32> to vector<1x8x8xf32>
    %35 = arith.divf %31, %34 : vector<1x8x8xf32>
    "tpu.trace_start"() <{level = 10 : i32, message = "blm,bmd->bld"}> : () -> ()
    %cst_14 = arith.constant dense<0.000000e+00> : vector<1x8x16xf32>
    %36 = tpu.matmul %35, %23, %cst_14 {dimension_numbers = #tpu.dot_dimension_numbers<[2], [1], [1], [2], [0, 0, 0, 1, 1, 2], [0], [0]>} : vector<1x8x8xf32>, vector<1x8x16xf32>, vector<1x8x16xf32> -> vector<1x8x16xf32>
    "tpu.trace_stop"() : () -> ()
    %c0_15 = arith.constant 0 : index
    %c0_16 = arith.constant 0 : index
    %37 = vector.load %arg8[%c0_15, %c0_16] : memref<8x128xf32, #tpu.memory_space<vmem>>, vector<8x128xf32>
    %38 = vector.shape_cast %36 : vector<1x8x16xf32> to vector<8x16xf32>
    %c0_17 = arith.constant 0 : index
    %c0_18 = arith.constant 0 : index
    %c0_19 = arith.constant 0 : index
    %39 = vector.load %arg5[%c0_17, %c0_18, %c0_19] : memref<1x16x128xf32, #tpu.memory_space<vmem>>, vector<1x16x128xf32>
    %40 = vector.shape_cast %39 : vector<1x16x128xf32> to vector<16x128xf32>
    %cst_20 = arith.constant dense<0.000000e+00> : vector<8x128xf32>
    %41 = tpu.matmul %38, %40, %cst_20 {dimension_numbers = #tpu.dot_dimension_numbers<[1], [0], [0], [1], [0, 0, 1, 1], [], []>} : vector<8x16xf32>, vector<16x128xf32>, vector<8x128xf32> -> vector<8x128xf32>
    %42 = arith.addf %37, %41 : vector<8x128xf32>
    %c0_21 = arith.constant 0 : index
    %c0_22 = arith.constant 0 : index
    %43 = vector.load %arg8[%c0_21, %c0_22] : memref<8x128xf32, #tpu.memory_space<vmem>>, vector<8x128xf32>
    tpu.vector_store %arg8[%c0_21, %c0_22], %42 {strides = array<i32>} : memref<8x128xf32, #tpu.memory_space<vmem>>, vector<8x128xf32>,
    %c1_i32 = arith.constant 1 : i32
    %44 = arith.cmpi eq, %arg1, %c1_i32 : i32
    %45 = arith.extui %44 : i1 to i32
    %c0_i32_23 = arith.constant 0 : i32
    %46 = arith.cmpi ne, %45, %c0_i32_23 : i32
    scf.if %46 {
      %c0_24 = arith.constant 0 : index
      %c0_25 = arith.constant 0 : index
      %47 = vector.load %arg8[%c0_24, %c0_25] : memref<8x128xf32, #tpu.memory_space<vmem>>, vector<8x128xf32>
      %48 = arith.negf %47 : vector<8x128xf32>
      %49 = math.exp %48 : vector<8x128xf32>
      %cst_26 = arith.constant 1.000000e+00 : f32
      %50 = vector.broadcast %cst_26 : f32 to vector<8x128xf32>
      %51 = arith.addf %50, %49 : vector<8x128xf32>
      %52 = arith.divf %50, %51 : vector<8x128xf32>
      %53 = arith.mulf %47, %52 : vector<8x128xf32>
      %54 = arith.addf %1, %53 : vector<8x128xf32>
      %cst_27 = arith.constant dense<0.000000e+00> : vector<8xf32>
      %55 = vector.multi_reduction <add>, %54, %cst_27 [1] : vector<8x128xf32> to vector<8xf32>
      %56 = vector.shape_cast %55 : vector<8xf32> to vector<8x1xf32>
      %cst_28 = arith.constant 3.125000e-02 : f32
      %57 = vector.broadcast %cst_28 : f32 to vector<8x1xf32>
      %58 = arith.mulf %56, %57 : vector<8x1xf32>
      %59 = vector.broadcast %58 : vector<8x1xf32> to vector<8x128xf32>
      %60 = arith.subf %54, %59 : vector<8x128xf32>
      %61 = tpu.iota {dimensions = array<i32: 1>} : vector<8x128xi32>
      %c32_i32 = arith.constant 32 : i32
      %62 = vector.broadcast %c32_i32 : i32 to vector<8x128xi32>
      %63 = arith.cmpi slt, %61, %62 : vector<8x128xi32>
      %cst_29 = arith.constant 0.000000e+00 : f32
      %64 = vector.broadcast %cst_29 : f32 to vector<8x128xf32>
      %65 = arith.select %63, %60, %64 : vector<8x128xi1>, vector<8x128xf32>
      %66 = arith.mulf %65, %65 : vector<8x128xf32>
      %cst_30 = arith.constant dense<0.000000e+00> : vector<8xf32>
      %67 = vector.multi_reduction <add>, %66, %cst_30 [1] : vector<8x128xf32> to vector<8xf32>
      %68 = vector.shape_cast %67 : vector<8xf32> to vector<8x1xf32>
      %cst_31 = arith.constant 3.125000e-02 : f32
      %69 = vector.broadcast %cst_31 : f32 to vector<8x1xf32>
      %70 = arith.mulf %68, %69 : vector<8x1xf32>
      %cst_32 = arith.constant 9.99999974E-6 : f32
      %71 = vector.broadcast %cst_32 : f32 to vector<8x1xf32>
      %72 = arith.addf %70, %71 : vector<8x1xf32>
      %73 = math.rsqrt %72 : vector<8x1xf32>
      %74 = vector.broadcast %73 : vector<8x1xf32> to vector<8x128xf32>
      %75 = arith.mulf %65, %74 : vector<8x128xf32>
      %76 = vector.shape_cast %75 : vector<8x128xf32> to vector<1x8x128xf32>
      %c0_33 = arith.constant 0 : index
      %c0_34 = arith.constant 0 : index
      %c0_35 = arith.constant 0 : index
      %77 = vector.load %arg7[%c0_33, %c0_34, %c0_35] : memref<1x8x128xf32, #tpu.memory_space<vmem>>, vector<1x8x128xf32>
      tpu.vector_store %arg7[%c0_33, %c0_34, %c0_35], %76 {strides = array<i32>} : memref<1x8x128xf32, #tpu.memory_space<vmem>>, vector<1x8x128xf32>,
    } else {
    }
    return
  }
  func.func @transform_0(%arg0: i32, %arg1: i32) -> (i32, i32, i32) {
    %c0_i32 = arith.constant 0 : i32
    %c0_i32_0 = arith.constant 0 : i32
    %c0_i32_1 = arith.constant 0 : i32
    return %arg0, %c0_i32, %c0_i32_0 : i32, i32, i32
  }
  func.func @transform_1(%arg0: i32, %arg1: i32) -> (i32, i32, i32) {
    %c0_i32 = arith.constant 0 : i32
    %c0_i32_0 = arith.constant 0 : i32
    %c0_i32_1 = arith.constant 0 : i32
    return %arg1, %c0_i32, %c0_i32_0 : i32, i32, i32
  }
  func.func @transform_2(%arg0: i32, %arg1: i32) -> (i32, i32, i32) {
    %c0_i32 = arith.constant 0 : i32
    %c0_i32_0 = arith.constant 0 : i32
    %c0_i32_1 = arith.constant 0 : i32
    return %arg1, %c0_i32, %c0_i32_0 : i32, i32, i32
  }
  func.func @transform_3(%arg0: i32, %arg1: i32) -> (i32, i32, i32) {
    %c0_i32 = arith.constant 0 : i32
    %c0_i32_0 = arith.constant 0 : i32
    %c0_i32_1 = arith.constant 0 : i32
    return %arg1, %c0_i32, %c0_i32_0 : i32, i32, i32
  }
  func.func @transform_4(%arg0: i32, %arg1: i32) -> (i32, i32) {
    %c0_i32 = arith.constant 0 : i32
    %c0_i32_0 = arith.constant 0 : i32
    %c0_i32_1 = arith.constant 0 : i32
    return %c0_i32, %c0_i32_0 : i32, i32
  }
  func.func @transform_5(%arg0: i32, %arg1: i32) -> (i32, i32, i32) {
    %c0_i32 = arith.constant 0 : i32
    %c0_i32_0 = arith.constant 0 : i32
    %c0_i32_1 = arith.constant 0 : i32
    return %arg0, %c0_i32, %c0_i32_0 : i32, i32, i32
  }
}

</mosaic_0001>

<bundles_post_ra>
// kernel: tpu_custom_call.1
= control target key start
LH: loop header
LB: loop body
LE: loop exit
PB: predicated region body
PF: predicated region fallthrough
CT: control target
= control target key end

     0   :  { %10 = vsyncpa [#allocation4], 0  ;;  %s1356_s0 = inlined_call_operand.vmem [shape: f32[2,8,128], index: 0, kind: input, shape index: {}]   ;;  %s1357_s1 = inlined_call_operand.vmem [shape: f32[2,128,48], index: 1, kind: input, shape index: {}]   ;;  %s1358_s2 = inlined_call_operand.vmem [shape: f32[2,1,48], index: 2, kind: input, shape index: {}]   ;;  %s1359_s3 = inlined_call_operand.vmem [shape: f32[2,16,128], index: 3, kind: input, shape index: {}]   ;;  %s1360_s4 = inlined_call_operand.vmem [shape: f32[1,128], index: 4, kind: input, shape index: {}]   ;;  %s1361_s5 = inlined_call_operand.hbm [shape: f32[2,8,128], index: 5, kind: output, shape index: {}]  }
   0x1   :  { %12 = vsyncpa [#allocation4 + $0x1], 0  ;;  %s1142_s18 = smov 0   ;;  %s1144_s19 = smov 0  }
   0x2   :  { %s1146_s20 = smov 0   ;;  %s1148_s21 = smov 0  }
   0x3   :  { %s1150_s22 = smov 0   ;;  %s1152_s23 = smov 0  }
   0x4   :  { %s1154_s24 = smov 0   ;;  %s1156_s25 = smov 0  }
   0x5 LB: > { %1366 = sst [smem:[#allocation6_spill]] %s1096_s23  ;;  %s790_s26 = sadd.s32 4294967295, %s1104_s25   ;;  %s1104_s25 = sphi %s1156_s25, %s18_s25   ;;  %s1100_s24 = sphi %s1154_s24, %s1378_s24   ;;  %s1096_s23 = sphi %s1152_s23, %s1377_s23   ;;  %s1092_s22 = sphi %s1150_s22, %s1376_s22   ;;  %s1088_s21 = sphi %s1148_s21, %s1382_s21   ;;  %s1084_s20 = sphi %s1146_s20, %s1381_s20   ;;  %s1080_s19 = sphi %s1144_s19, %s1380_s19   ;;  %s1076_s18 = sphi %s1142_s18, %s1379_s18  }
   0x6   : > { %1367 = sst [smem:[#allocation7_spill]] %s1100_s24  ;;  %s791_s27 = sadd.s32 4294967294, %s1104_s25  }
   0x7   : > { %s27_s28 = sadd.s32 1, %s1096_s23  ;;  %s30_s29 = sadd.s32 1, %s1100_s24 }
   0x8   : > { %p28_p0 = scmp.ge.s32.totalorder %s27_s28, 2  ;;  %p172_p1 = scmp.ne.s32.totalorder %s1084_s20, %s1080_s19 }
   0x9   : > { %p173_p2 = scmp.eq.s32.totalorder %s790_s26, 3  ;;  %p178_p4 = scmp.ne.s32.totalorder %s1080_s19, %s1076_s18 }
   0xa   : > { %s1384_s28 = smov (%p28_p0, %s27_s28), 0  ;;  %s1386_s29 = smov (!%p28_p0, %s30_s29), %s1100_s24 }
   0xb   : > { %1368 = sst [smem:[#allocation8_spill]] %s1384_s28  ;;  %p1191_p3 = por %p173_p2, %p172_p1 }
   0xc   : > { %p32_p5 = scmp.ge.s32.totalorder %s1386_s29, 2  ;;  %p179_p6 = scmp.eq.s32.totalorder %s791_s27, 3 }
   0xd   : > { %p794_p7 = scmp.ge.s32.totalorder %s1104_s25, 1  ;;  %p229_p8 = scmp.lt.s32.totalorder %s1104_s25, 5 }
   0xe   : > { %s1388_s29 = smov (%p32_p5, %s1386_s29), 0  ;;  %p1201_p9 = por %p179_p6, %p178_p4 }
   0xf   : > { %1370 = sst [smem:[#allocation9_spill]] %s1388_s29  ;;  %p230_p10 = pnand %p794_p7, %p229_p8 }
  0x10   : > { %s159_s7 = ssub.s32 %s1100_s24, %s1388_s29  ;;  %s162_s8 = sadd.s32 1, %s1084_s20 }
  0x11   : > { %p160_p11 = scmp.eq.s32.totalorder %s159_s7, 0  ;;  %233 = sbr.rel (%p230_p10) target bundleno = 1753 (0x6d9), region = 40 }
  0x12   : > { %s1362_s10 = sand.u32 (!%p230_p10), 1, %s1080_s19   ;;  %p269_p12 = scmp.lt.s32.totalorder (!%p230_p10), %s1092_s22, 1 }
  0x13   : > { %s1209_s9 = scalar_select %p160_p11, %s1084_s20, %s162_s8  }
  0x14   : > { %s1215_s11 = sshll.u32 (!%p230_p10), %s1362_s10, 3  ;;  %p273_p13 = scmp.lt.s32.totalorder (!%p230_p10), %s1088_s21, 1 }
  0x15   : > { %1372 = sst [smem:[#allocation10_spill]] %s1209_s9  ;;  %s268_s15 = scalar_lea.vmem (!%p230_p10), [#allocation3], %s1215_s11 }
  0x16   : > { %p801_p0 = scmp.ne.s32.totalorder (!%p230_p10), %s1088_s21, 0 }
  0x18   : > { %s270_s12 = scalar_select %p269_p12, %s1092_s22, 1 }
  0x19   : > { %s1220_s13 = scalar_select %p273_p13, %s1088_s21, 1 }
  0x1a   : > { %s796_s14 = sshll.u32 %s270_s12, 3  ;;  %290 = sbr.rel (%p801_p0) target bundleno = 33 (0x21), region = 44  ;;  %v802_v1 = vld [vmem:[%s1360_s4] ss:$0 sm:$0xff] (!%p801_p0) }
  0x1b   : > { %s272_s17 = scalar_lea.vmem %s1356_s0, %s796_s14  ;;  %s815_s26 = sshll.u32 %s1220_s13, 7  ;;  %298 = vst [vmem:[#allocation2] sm:$0xff] (!%p801_p0), %v802_v1 }
  0x1c   : > { %s1229_s8 = scalar_lea.vmem %s1357_s1, %s815_s26  ;;  %s280_s28 = scalar_lea.vmem %s1358_s2, %s1220_s13  ;;  %v1235_v0 = vld [vmem:[%s272_s17] sm:$0xff] }
  0x1d   : > { %s816_s24 = sshll.u32 %s1220_s13, 4 }
  0x1e   : > { %s1241_s12 = scalar_lea.vmem %s1359_s3, %s816_s24 }
  0x21 PF: > { %v299_v2 = vld [vmem:[%s1229_s8] sm:$0xff]  ;;  %v300_v3 = vld [vmem:[%s1229_s8 + $0x8] sm:$0xff]  ;;  %v301_v4 = vld [vmem:[%s1229_s8 + $0x10] sm:$0xff]  ;;  %v1106_v5 = vmov 0.0|0.0   ;;  %vm1107_vm0 = vmmov 0   ;;  %v1108_v8 = vmov 0.0  }
  0x22   : > { %893 = vmatprep.subr.bf16.mxu0 %v1106_v5  ;;  %v894_v6 = vpack.c.bf16 %v300_v3, %v299_v2  ;;  %v302_v7 = vld [vmem:[%s1229_s8 + $0x18] sm:$0xff]  ;;  %873 = vmatprep.mubr.msk.f32.mxu0 %vm1107_vm0, %v1108_v8  ;;  %v303_v10 = vld [vmem:[%s1229_s8 + $0x20] sm:$0xff]  ;;  %v304_v11 = vld [vmem:[%s1229_s8 + $0x28] sm:$0xff]  ;;  %s1109_s29 = smov 112   ;;  %vm402_vm1 = vcmask 130048   ;;  %vm478_vm2 = vcmask 64512  }
  0x23   : > { %876 = vmatprep.subr.mxu1 %v1108_v8  ;;  %878 = vmatprep.mubr.msk.f32.mxu1 %vm1107_vm0, %v1108_v8  ;;  %v897_v9 = vpack.c.bf16 %v302_v7, %v301_v4  ;;  %v900_v12 = vpack.c.bf16 %v304_v11, %v303_v10  ;;  %v305_v13 = vld [vmem:[%s1229_s8 + $0x30] sm:$0xff]  ;;  %v306_v14 = vld [vmem:[%s1229_s8 + $0x38] sm:$0xff]  ;;  %v307_v16 = vld [vmem:[%s1229_s8 + $0x40] sm:$0xff]  ;;  %p809_p1 = scmp.ne.s32.totalorder %s1088_s21, 1 }
  0x24   : > { %895 = vmatpush3.bf16.msra.mxu0 %v894_v6  ;;  %v903_v15 = vpack.c.bf16 %v306_v14, %v305_v13  ;;  %v308_v17 = vld [vmem:[%s1229_s8 + $0x48] sm:$0xff]  ;;  %v309_v19 = vld [vmem:[%s1229_s8 + $0x50] sm:$0xff]  ;;  %v310_v20 = vld [vmem:[%s1229_s8 + $0x58] sm:$0xff]  ;;  %v661_v4 = vlaneseq (!%p809_p1) }
  0x25   : > { %896 = vmatprep.subr.bf16.mxu0 %v1106_v5  ;;  %v906_v18 = vpack.c.bf16 %v308_v17, %v307_v16  ;;  %v909_v21 = vpack.c.bf16 %v310_v20, %v309_v19  ;;  %v311_v22 = vld [vmem:[%s1229_s8 + $0x60] sm:$0xff]  ;;  %v312_v23 = vld [vmem:[%s1229_s8 + $0x68] sm:$0xff]  ;;  %v313_v25 = vld [vmem:[%s1229_s8 + $0x70] sm:$0xff] }
  0x26   : > { %v912_v24 = vpack.c.bf16 %v312_v23, %v311_v22  ;;  %v314_v26 = vld [vmem:[%s1229_s8 + $0x78] sm:$0xff]  ;;  %v803_v28 = vld [vmem:[%s280_s28] ss:$0 sm:$0xff]  ;;  %s1110_s28 = smov 96   ;;  %v568_v50 = vld [vmem:[%s1241_s12 + $0x8] sm:$0xff] }
  0x27   : > { %v915_v27 = vpack.c.bf16 %v314_v26, %v313_v25  ;;  %v567_v49 = vld [vmem:[%s1241_s12] sm:$0xff] }
  0x28   : > { %898 = vmatpush3.bf16.msra.mxu0 %v897_v9  ;;  %v918_v52 = vpack.c.bf16 %v568_v50, %v567_v49  ;;  %v566_v56 = vld [vmem:[#allocation2] sm:$0xff] }
  0x29   : > { %899 = vmatprep.subr.bf16.mxu0 %v1106_v5 }
  0x2c   : > { %901 = vmatpush3.bf16.msra.mxu0 %v900_v12 }
  0x2d   : > { %902 = vmatprep.subr.bf16.mxu0 %v1106_v5 }
  0x30   : > { %904 = vmatpush3.bf16.msra.mxu0 %v903_v15 }
  0x31   : > { %905 = vmatprep.subr.bf16.mxu0 %v1106_v5 }
  0x34   : > { %907 = vmatpush3.bf16.msra.mxu0 %v906_v18 }
  0x35   : > { %908 = vmatprep.subr.bf16.mxu0 %v1106_v5 }
  0x38   : > { %910 = vmatpush3.bf16.msra.mxu0 %v909_v21 }
  0x39   : > { %911 = vmatprep.subr.bf16.mxu0 %v1106_v5 }
  0x3c   : > { %913 = vmatpush3.bf16.msra.mxu0 %v912_v24 }
  0x3d   : > { %914 = vmatprep.subr.bf16.mxu0 %v1106_v5 }
  0x40   : > { %916 = vmatpush3.bf16.msra.mxu0 %v915_v27 }
  0x43   : > { %874 = vmatmul.mubr.f32.vlgmr.msra.gmra.mrb[0].mxu0 %v1235_v0 }
 0x116   : > { %v388_v29 = vpop.f32.mrb[0].mxu0 }
 0x117   : > { %v389_v30 = vadd.f32 %v803_v28, %v388_v29  ;;  %v875_v31 = vpop.f32.mrb[1].mxu0 }
 0x119   : > { %v804_v32 = vmul.f32 -1.442695, %v389_v30 }
 0x11b   : > { %996 = vpow2.f32 %v804_v32 }
 0x125   : > { %v997_v33 = vpop.eup %996 }
 0x126   : > { %v395_v34 = vadd.f32 1.0, %v997_v33 }
 0x128   : > { %998 = vrcp.f32 %v395_v34 }
 0x132   : > { %v999_v35 = vpop.eup %998 }
 0x133   : > { %v398_v36 = vmul.f32 %v999_v35, %v389_v30 }
 0x135   : > { %400 = vrot.lane.b32.xlu0 %v398_v36, %s1109_s29 }
 0x1a7   : > { %v401_v37 = vpop.permute.xlu0 %400 }
 0x1a8   : > { %877 = vmatpush3.xpose.msk.msra.mxu1 %vm402_vm1, %v401_v37 }
 0x1a9   : > { %881 = vmatprep.subr.mxu1 %v1108_v8 }
 0x1ab   : > { %879 = vmatmul.mubr.msk.f32.vlgmr.msra.gmra.mrb[0].mxu1 %vm402_vm1, %v398_v36 }
 0x1ac   : > { %883 = vmatprep.mubr.msk.f32.mxu1 %vm1107_vm0, %v1108_v8 }
 0x27e   : > { %v473_v38 = vpop.f32.mrb[0].mxu1 }
 0x27f   : > { %v477_v39 = vmul.f32 0.35355338, %v473_v38  ;;  %v880_v40 = vpop.f32.mrb[1].mxu1 }
 0x281   : > { %v479_v41 = vsel %vm478_vm2, %v477_v39, -inf }
 0x282   : > { %480 = vmax.xlane.f32.xlu0 %v479_v41 }
 0x30f   : > { %v481_v42 = vpop.xlane.xlu0 %480 }
 0x310   : > { %v482_v43 = vsub.f32 %v477_v39, %v481_v42 }
 0x312   : > { %v483_v44 = vmul.f32 1.442695, %v482_v43 }
 0x314   : > { %1000 = vpow2.f32 %v483_v44 }
 0x31e   : > { %v1001_v45 = vpop.eup %1000 }
 0x31f   : > { %v485_v46 = vsel %vm478_vm2, %v1001_v45, 0.0 }
 0x320   : > { %486 = vadd.xlane.f32.xlu1 %v485_v46 }
 0x331   : > { %490 = vrot.lane.b32.xlu1 %v398_v36, %s1110_s28 }
 0x3ad   : > { %v487_v47 = vpop.xlane.xlu1 %486 }
 0x3ae   : > { %1002 = vrcp.f32 %v487_v47 }
 0x3b1   : > { %v491_v48 = vpop.permute.xlu1 %490 }
 0x3b2   : > { %882 = vmatpush3.msra.mxu1 %v491_v48 }
 0x3b3   : > { %917 = vmatprep.subr.bf16.mxu1 %v1106_v5  ;;  %v662_v5 = vand.u32 (!%p809_p1), 127, %v661_v4 }
 0x3b5   : > { %vm663_vm3 = vcmp.lt.s32.totalorder (!%p809_p1), %v662_v5, 32 }
 0x3b8   : > { %v1003_v51 = vpop.eup %1002 }
 0x3b9   : > { %v489_v53 = vmul.f32 %v1003_v51, %v1001_v45 }
 0x3bb   : > { %884 = vmatmul.mubr.msk.f32.vlgmr.msra.gmra.mrb[2].mxu1 %vm478_vm2, %v489_v53 }
 0x3bc   : > { %919 = vmatpush3.bf16.msra.mxu1 %v918_v52  ;;  %890 = vmatprep.mubr.msk.f32.mxu1 %vm1107_vm0, %v1108_v8 }
 0x48e   : > { %v562_v54 = vpop.f32.mrb[2].mxu1 }
 0x48f   : > { %v885_v55 = vpop.f32.mrb[3].mxu1  ;;  %891 = vmatmul.mubr.msk.f32.vlgmr.msra.gmra.mrb[4].mxu1 %vm402_vm1, %v562_v54 }
 0x55f   : > { %647 = sbr.rel (%p809_p1) target bundleno = 1728 (0x6c0), region = 48 }
 0x562   : > { %v638_v57 = vpop.f32.mrb[4].mxu1 }
 0x563   : > { %v642_v58 = vadd.f32 %v638_v57, %v566_v56  ;;  %v892_v59 = vpop.f32.mrb[5].mxu1 }
 0x565   : > { %643 = vst [vmem:[#allocation2] sm:$0xff] %v642_v58 }
 0x56c   : > { %v648_v60 = vld [vmem:[#allocation2] sm:$0xff] }
 0x56d   : > { %v810_v61 = vmul.f32 -1.442695, %v648_v60 }
 0x56f   : > { %1004 = vpow2.f32 %v810_v61 }
 0x579   : > { %v1005_v62 = vpop.eup %1004 }
 0x57a   : > { %v652_v63 = vadd.f32 1.0, %v1005_v62 }
 0x57c   : > { %1006 = vrcp.f32 %v652_v63 }
 0x586   : > { %v1007_v1 = vpop.eup %1006 }
 0x587   : > { %v655_v2 = vmul.f32 %v1007_v1, %v648_v60 }
 0x589   : > { %v656_v3 = vadd.f32 %v655_v2, %v1235_v0 }
 0x58b   : > { %657 = vadd.xlane.f32.xlu0 %v656_v3 }
 0x618   : > { %v658_v6 = vpop.xlane.xlu0 %657 }
 0x619   : > { %v659_v7 = vmul.f32 0.03125, %v658_v6 }
 0x61b   : > { %v660_v8 = vsub.f32 %v656_v3, %v659_v7 }
 0x61d   : > { %v664_v9 = vsel %vm663_vm3, %v660_v8, 0.0 }
 0x61e   : > { %v665_v10 = vmul.f32 %v664_v9, %v664_v9 }
 0x620   : > { %666 = vadd.xlane.f32.xlu0 %v665_v10 }
 0x6ad   : > { %v667_v11 = vpop.xlane.xlu0 %666 }
 0x6ae   : > { %v668_v12 = vmul.f32 0.03125, %v667_v11 }
 0x6b0   : > { %v669_v13 = vadd.f32 1e-05, %v668_v12 }
 0x6b2   : > { %1008 = vrsqrt.f32 %v669_v13 }
 0x6bc   : > { %v1009_v14 = vpop.eup %1008 }
 0x6bd   : > { %v671_v15 = vmul.f32 %v1009_v14, %v664_v9 }
 0x6bf   : > { %672 = vst [vmem:[%s268_s15] sm:$0xff] %v671_v15 }
 0x6c0 PF: > { %s812_s21 = sshll.u32 %s1092_s22, 7  ;;  %s687_s17 = sshll.u32 %s268_s15, 4  ;;  %s688_s17 = int_to_ptr.vmem [resolvable:$true] %s687_s17 }
 0x6c1   : > { %s1305_s13 = scalar_lea.hbm %s1361_s5, %s812_s21  ;;  %s1373_s26 = sand.u32 1, %s1080_s19  }
 0x6c2   : > { %s674_s27 = scalar_lea.sflag [#allocation4], %s1373_s26  ;;  %s1010_s7 = scalar_lea.vmem %s688_s17, 128 }
 0x6c3   : > { %p1011_p2 = scmp.ne.s32.totalorder %s688_s17, %s1010_s7  ;;  %s1111_s8 = smov [#allocation3]  }
 0x6c4   : > { %s1014_s12 = sshll.u32 %s1111_s8, 4  ;;  %s1015_s12 = int_to_ptr.vmem [resolvable:$false] %s1014_s12 }
 0x6c5   : > { %p1012_p4 = pnand %p1011_p2, %p1191_p3  ;;  %s1016_s14 = scalar_lea.vmem %s1015_s12, 256 }
 0x6c6   : > { %p1017_p6 = scmp.lt.s32.totalorder %s688_s17, %s1015_s12  ;;  %p1018_p7 = scmp.lt.s32.totalorder %s1016_s14, %s1010_s7 }
 0x6c7   : > { %p1013_p5 = pneg %p1012_p4 }
 0x6c8   : > { %p1019_p8 = por %p1018_p7, %p1017_p6 }
 0x6ca   : > { %p1020_p10 = pnand %p1019_p8, %p1013_p5 }
 0x6cc   : > { %1023 = shalt.err (!%p1020_p10)
}
 0x6cd   : > { %s1024_s22 = scalar_lea.hbm %s1305_s13, 128  ;;  %s1028_s16 = scalar_lea.hbm %s1361_s5, 256 }
 0x6ce   : > { %p1025_p11 = scmp.ne.s32.totalorder %s1305_s13, %s1024_s22  ;;  %p1029_p0 = scmp.lt.u32.totalorder %s1305_s13, %s1361_s5 }
 0x6cf   : > { %p1030_p1 = scmp.lt.u32.totalorder %s1028_s16, %s1024_s22  ;;  %p1032_p4 = scmp.lt.u32.totalorder %s1024_s22, %s1305_s13 }
 0x6d0   : > { %p1026_p12 = pnand %p1025_p11, %p1191_p3 }
 0x6d1   : > { %p1031_p2 = por %p1030_p1, %p1029_p0 }
 0x6d2   : > { %p1027_p13 = pneg %p1026_p12 }
 0x6d3   : > { %p1033_p5 = por %p1032_p4, %p1031_p2 }
 0x6d5   : > { %p1034_p6 = pnand %p1033_p5, %p1027_p13 }
 0x6d7   : > { %1037 = shalt.err (!%p1034_p6)
}
 0x6d8   : > { %920 = dma.vmem_to_hbm [thread:$0]  (%p1191_p3), %s688_s17, 128, %s1305_s13, %s674_s27  }
 0x6d9 PF: > { %p926_p7 = scmp.ge.s32.totalorder %s1104_s25, 2  ;;  %s699_s29 = sand.u32 1, %s1076_s18  }
 0x6da   : > { %s700_s28 = scalar_lea.sflag [#allocation4], %s699_s29 }
 0x6db   : > { %p923_p8 = pnand %p926_p7, %p1201_p9 }
 0x6dd   : > { %1071 = dma.done.wait (!%p923_p8), %s700_s28, 128  }
 0x6de   : > { %1073 = vsyncadd (!%p923_p8), %s700_s28, 4294967168  ;;  %s18_s25 = sadd.s32 1, %s1104_s25   ;;  %s1374_s21 = sld [smem:[#allocation10_spill]] }
 0x6df   : > { %p15_p10 = scmp.ge.s32.totalorder %s18_s25, 6   ;;  %s1375_s30 = sld [smem:[#allocation6_spill]] }
 0x6e0   : > { %s1376_s22 = sld [smem:[#allocation7_spill]]  ;;  %s1377_s23 = sld [smem:[#allocation8_spill]] }
 0x6e1   : > { %s1378_s24 = sld [smem:[#allocation9_spill]]  ;;  %s1379_s18 = smov %s1080_s19 }
 0x6e2   : > { %s1380_s19 = smov %s1084_s20  ;;  %17 = sbr.rel (!%p15_p10) target bundleno = 5 (0x5), region = 92 }
 0x6e4   : > { %s1381_s20 = smov %s1374_s21 }
 0x6e5   : > { %s1382_s21 = smov %s1375_s30 }
 0x6e9   :  { %705 = vsyncpa [#allocation4], 1 }
 0x6ea   :  { %707 = vsyncpa [#allocation4 + $0x1], 1 }

</bundles_post_ra>
